<compile_context>
chip_gen: v6e
topology: v6e:2x2x1
jax: 0.10.0
libtpu: 0.0.40
codegen_flags: <defaults>
</compile_context>

<pallas_src>
import jax
import jax.numpy as jnp
from jax.experimental import pallas as pl
from jax.experimental.pallas import tpu as pltpu


def mlp_kernel(p_ref, x_ref, o_ref):
    # p_ref: (16, 128) packed parameter slab (resident across the whole grid)
    # x_ref: (1, TILE_B)  input, batch on the lane axis
    # o_ref: (1, TILE_B)  output, batch on the lane axis
    x = x_ref[...]                                   # (1, Bt) f32

    # Static slices of the resident weight slab (zero-cost views / tiny loads).
    w2 = p_ref[:, 0:16]                              # (16, 16) zero-padded 10x10
    w1 = p_ref[:, 16:17]                             # (16, 1)  zero-padded (10,1)
    b1 = p_ref[:, 17:18]                             # (16, 1)
    b2 = p_ref[:, 18:19]                             # (16, 1)
    w3 = p_ref[:, 19:20]                             # (16, 1)
    b3 = p_ref[0:1, 20:21]                           # (1, 1)

    # Layer 1: (B,1)@(1,10) outer product -> pure VPU broadcast multiply-add.
    # Padded rows 10..15 are zeros -> relu(0*x + 0) == 0, so padding is inert.
    h1 = jnp.maximum(w1 * x + b1, 0.0)               # (16, Bt)

    # Layer 2: the only real contraction -> MXU.
    h2 = jnp.dot(w2, h1, preferred_element_type=jnp.float32) + b2
    h2 = jnp.maximum(h2, 0.0)                        # (16, Bt), pad rows stay 0

    # Layer 3: (B,10)@(10,1) reduction -> VPU multiply + XLU sublane sum.
    h3 = jnp.sum(w3 * h2, axis=0, keepdims=True) + b3  # (1, Bt)

    o_ref[...] = h3.astype(o_ref.dtype)


def pack_params(params):
    """Pack all 6 parameter tensors (torch layout) into one (16,128) f32 slab.

    cols 0:16  -> l2.weight, zero-padded to (16,16)
    col  16    -> l1.weight[:,0]   (10 values, zero-padded to 16 rows)
    col  17    -> l1.bias
    col  18    -> l2.bias
    col  19    -> l3.weight[0,:]
    col  20    -> l3.bias (row 0)
    """
    slab = jnp.zeros((16, 128), jnp.float32)
    slab = slab.at[0:10, 0:10].set(params["w2"].astype(jnp.float32))
    slab = slab.at[0:10, 16].set(params["w1"][:, 0].astype(jnp.float32))
    slab = slab.at[0:10, 17].set(params["b1"].astype(jnp.float32))
    slab = slab.at[0:10, 18].set(params["b2"].astype(jnp.float32))
    slab = slab.at[0:10, 19].set(params["w3"][0, :].astype(jnp.float32))
    slab = slab.at[0, 20].set(params["b3"][0].astype(jnp.float32))
    return slab


def mlp_forward(x, params, *, tile_b=512):
    """x: (B, 1) float32. params in torch layout:
       w1 (10,1), b1 (10,), w2 (10,10), b2 (10,), w3 (1,10), b3 (1,)."""
    B = x.shape[0]
    assert x.ndim == 2 and x.shape[1] == 1

    # Lane tile over batch: multiple of 128, no larger than the padded batch.
    tile_b = max(128, (int(tile_b) // 128) * 128)
    tile_b = min(tile_b, pl.cdiv(B, 128) * 128)
    b_pad = pl.cdiv(B, tile_b) * tile_b

    slab = pack_params(params)

    # Transpose the problem: batch on the lane axis. (B,1) -> (1,B) is a free
    # reshape (same element order).
    x_t = x.reshape(1, B).astype(jnp.float32)
    if b_pad != B:
        x_t = jnp.pad(x_t, ((0, 0), (0, b_pad - B)))

    out_t = pl.pallas_call(
        mlp_kernel,
        out_shape=jax.ShapeDtypeStruct((1, b_pad), jnp.float32),
        grid_spec=pltpu.PrefetchScalarGridSpec(
            num_scalar_prefetch=0,
            grid=(b_pad // tile_b,),
            in_specs=[
                # Weight slab: same block every step -> one DMA, stays resident.
                pl.BlockSpec((16, 128), lambda i: (0, 0)),
                # Input: lane-dense batch tiles.
                pl.BlockSpec((1, tile_b), lambda i: (0, i)),
            ],
            out_specs=pl.BlockSpec((1, tile_b), lambda i: (0, i)),
        ),
        compiler_params=pltpu.CompilerParams(
            # Batch tiles are independent -> shard across TCs on v7x megacore.
            dimension_semantics=("parallel",),
        ),
    )(slab, x_t)

    return out_t[:, :B].reshape(B, 1).astype(x.dtype)


def init_params(key):
    """Deterministic init mirroring torch's default nn.Linear init:
    U(-1/sqrt(fan_in), 1/sqrt(fan_in)) for weights and biases. Torch layout."""
    ks = jax.random.split(key, 6)

    def uniform(k, shape, fan_in):
        bound = 1.0 / jnp.sqrt(float(fan_in))
        return jax.random.uniform(k, shape, jnp.float32, -bound, bound)

    return {
        "w1": uniform(ks[0], (10, 1), 1),    # l1.weight
        "b1": uniform(ks[1], (10,), 1),      # l1.bias
        "w2": uniform(ks[2], (10, 10), 10),  # l2.weight
        "b2": uniform(ks[3], (10,), 10),     # l2.bias
        "w3": uniform(ks[4], (1, 10), 10),   # l3.weight
        "b3": uniform(ks[5], (1,), 10),      # l3.bias
    }


def _ref(x, p):
    # Pure-JAX reference with torch semantics: y = x @ W.T + b
    h = jnp.maximum(x @ p["w1"].T + p["b1"], 0.0)
    h = jnp.maximum(h @ p["w2"].T + p["b2"], 0.0)
    return h @ p["w3"].T + p["b3"]


if __name__ == "__main__":
    key = jax.random.PRNGKey(0)
    pkey, xkey = jax.random.split(key)

    params = init_params(pkey)

    # Small example consistent with Linear(1, ...): (batch, 1)
    x_small = jax.random.normal(xkey, (8, 1), dtype=jnp.float32)
    out_small = jax.block_until_ready(mlp_forward(x_small, params))
    assert out_small.shape == (8, 1)
    assert jnp.allclose(out_small, _ref(x_small, params), atol=1e-5, rtol=1e-5)

    # Larger batch exercising the batch grid + lane padding path.
    x_big = jax.random.normal(jax.random.PRNGKey(1), (1000, 1), dtype=jnp.float32)
    out_big = jax.block_until_ready(mlp_forward(x_big, params, tile_b=512))
    assert out_big.shape == (1000, 1)
    assert jnp.allclose(out_big, _ref(x_big, params), atol=1e-5, rtol=1e-5)

    print("KERNEL_OK")
</pallas_src>

<mosaic_0001>
module attributes {stable_mosaic.version = 11 : i64} {
  func.func @mlp_kernel(%arg0: i32, %arg1: memref<16x128xf32, #tpu.memory_space<vmem>>, %arg2: memref<1x128xf32, #tpu.memory_space<vmem>>, %arg3: memref<1x128xf32, #tpu.memory_space<vmem>>) attributes {dimension_semantics = [#tpu.dimension_semantics<parallel>], iteration_bounds = array<i64: 1>, scalar_prefetch = 0 : i64, scratch_operands = 0 : i64, tpu.core_type = #tpu.core_type<tc>, window_params = [{pipeline_mode = #tpu.pipeline_mode<synchronous>, transform_indices = @transform_0, window_bounds = array<i64: 16, 128>}, {transform_indices = @transform_1, window_bounds = array<i64: 1, 128>}, {transform_indices = @transform_2, window_bounds = array<i64: 1, 128>}]} {
    %c0 = arith.constant 0 : index
    %c0_0 = arith.constant 0 : index
    %0 = vector.load %arg2[%c0, %c0_0] : memref<1x128xf32, #tpu.memory_space<vmem>>, vector<1x128xf32>
    %c0_1 = arith.constant 0 : index
    %c0_2 = arith.constant 0 : index
    %1 = vector.load %arg1[%c0_1, %c0_2] : memref<16x128xf32, #tpu.memory_space<vmem>>, vector<16x16xf32>
    %c0_3 = arith.constant 0 : index
    %c16 = arith.constant 16 : index
    %2 = vector.load %arg1[%c0_3, %c16] : memref<16x128xf32, #tpu.memory_space<vmem>>, vector<16x1xf32>
    %c0_4 = arith.constant 0 : index
    %c17 = arith.constant 17 : index
    %3 = vector.load %arg1[%c0_4, %c17] : memref<16x128xf32, #tpu.memory_space<vmem>>, vector<16x1xf32>
    %c0_5 = arith.constant 0 : index
    %c18 = arith.constant 18 : index
    %4 = vector.load %arg1[%c0_5, %c18] : memref<16x128xf32, #tpu.memory_space<vmem>>, vector<16x1xf32>
    %c0_6 = arith.constant 0 : index
    %c19 = arith.constant 19 : index
    %5 = vector.load %arg1[%c0_6, %c19] : memref<16x128xf32, #tpu.memory_space<vmem>>, vector<16x1xf32>
    %c0_7 = arith.constant 0 : index
    %c20 = arith.constant 20 : index
    %6 = vector.load %arg1[%c0_7, %c20] : memref<16x128xf32, #tpu.memory_space<vmem>>, vector<1x1xf32>
    %7 = vector.broadcast %2 : vector<16x1xf32> to vector<16x128xf32>
    %8 = vector.broadcast %0 : vector<1x128xf32> to vector<16x128xf32>
    %9 = arith.mulf %7, %8 : vector<16x128xf32>
    %10 = vector.broadcast %3 : vector<16x1xf32> to vector<16x128xf32>
    %11 = arith.addf %9, %10 : vector<16x128xf32>
    %cst = arith.constant 0.000000e+00 : f32
    %12 = vector.broadcast %cst : f32 to vector<16x128xf32>
    %13 = arith.maximumf %11, %12 : vector<16x128xf32>
    %cst_8 = arith.constant dense<0.000000e+00> : vector<16x128xf32>
    %14 = tpu.matmul %1, %13, %cst_8 {dimension_numbers = #tpu.dot_dimension_numbers<[1], [0], [0], [1], [0, 0, 1, 1], [], []>} : vector<16x16xf32>, vector<16x128xf32>, vector<16x128xf32> -> vector<16x128xf32>
    %15 = vector.broadcast %4 : vector<16x1xf32> to vector<16x128xf32>
    %16 = arith.addf %14, %15 : vector<16x128xf32>
    %cst_9 = arith.constant 0.000000e+00 : f32
    %17 = vector.broadcast %cst_9 : f32 to vector<16x128xf32>
    %18 = arith.maximumf %16, %17 : vector<16x128xf32>
    %19 = vector.broadcast %5 : vector<16x1xf32> to vector<16x128xf32>
    %20 = arith.mulf %19, %18 : vector<16x128xf32>
    %cst_10 = arith.constant dense<0.000000e+00> : vector<128xf32>
    %21 = vector.multi_reduction <add>, %20, %cst_10 [0] : vector<16x128xf32> to vector<128xf32>
    %22 = vector.shape_cast %21 : vector<128xf32> to vector<1x128xf32>
    %23 = vector.broadcast %6 : vector<1x1xf32> to vector<1x128xf32>
    %24 = arith.addf %22, %23 : vector<1x128xf32>
    %c0_11 = arith.constant 0 : index
    %c0_12 = arith.constant 0 : index
    %25 = vector.load %arg3[%c0_11, %c0_12] : memref<1x128xf32, #tpu.memory_space<vmem>>, vector<1x128xf32>
    tpu.vector_store %arg3[%c0_11, %c0_12], %24 {strides = array<i32>} : memref<1x128xf32, #tpu.memory_space<vmem>>, vector<1x128xf32>,
    return
  }
  func.func @transform_0(%arg0: i32) -> (i32, i32) {
    %c0_i32 = arith.constant 0 : i32
    %c0_i32_0 = arith.constant 0 : i32
    %c0_i32_1 = arith.constant 0 : i32
    return %c0_i32, %c0_i32_0 : i32, i32
  }
  func.func @transform_1(%arg0: i32) -> (i32, i32) {
    %c0_i32 = arith.constant 0 : i32
    %c0_i32_0 = arith.constant 0 : i32
    return %c0_i32, %arg0 : i32, i32
  }
  func.func @transform_2(%arg0: i32) -> (i32, i32) {
    %c0_i32 = arith.constant 0 : i32
    %c0_i32_0 = arith.constant 0 : i32
    return %c0_i32, %arg0 : i32, i32
  }
}

</mosaic_0001>

<bundles_post_ra>
// kernel: tpu_custom_call.1
= control target key start
LH: loop header
LB: loop body
LE: loop exit
PB: predicated region body
PF: predicated region fallthrough
CT: control target
= control target key end

     0   :  { %7 = vsyncpa [#allocation3], 0  ;;  %s299_s0 = inlined_call_operand.hbm [shape: f32[16,128], index: 0, kind: input, shape index: {}]   ;;  %s300_s1 = inlined_call_operand.vmem [shape: f32[1,128], index: 1, kind: input, shape index: {}]   ;;  %s301_s2 = inlined_call_operand.hbm [shape: f32[1,128], index: 2, kind: output, shape index: {}]  }
   0x1   :  { %8 = vsyncpa [#allocation4], 0  ;;  %s264_s9 = smov [#allocation2]  }
   0x2   :  { %s14_s10 = sshll.u32 %s264_s9, 4  ;;  %s15_s10 = int_to_ptr.vmem [resolvable:$true] %s14_s10 }
   0x3   :  { %s228_s11 = scalar_lea.vmem %s15_s10, 256  ;;  %p233_p1 = scmp.lt.s32.totalorder %s15_s10, %s15_s10 }
   0x4   :  { %p229_p0 = scmp.ne.s32.totalorder %s15_s10, %s228_s11  ;;  %p234_p2 = scmp.lt.s32.totalorder %s228_s11, %s228_s11 }
   0x6   :  { %p235_p3 = por %p234_p2, %p233_p1 }
   0x8   :  { %p236_p4 = pnand %p235_p3, %p229_p0 }
   0xa   :  { %239 = shalt.err (!%p236_p4)
}
   0xb   :  { %s265_s12 = smov 128   ;;  %s266_s13 = smov 8  }
   0xc   :  { %20 = dma.hbm_to_vmem [thread:$0]  %s299_s0, 256, %s15_s10, [#allocation3], %s265_s12, %s265_s12, %s266_s13  }
   0xd   :  { %260 = dma.done.wait [#allocation3], 256  }
   0xe   :  { %261 = vsyncadd [#allocation3], 4294967040  ;;  %v267_v0 = vmov 17   ;;  %v268_v1 = vmov 16   ;;  %v28_v2 = vld [vmem:[#allocation2 + $0x8] sm:$0xff]  ;;  %v27_v3 = vld [vmem:[#allocation2] sm:$0xff] }
   0xf   :  { %213 = vset.pattern.permute.xlu1 %v267_v0  ;;  %212 = vset.pattern.permute.xlu0 %v268_v1  ;;  %vm68_vm0 = vcmask 130048   ;;  %v269_v4 = vmov 18   ;;  %v270_v5 = vmov 19   ;;  %v29_v6 = vld [vmem:[#allocation2] sm:$0x1]  ;;  %v271_v7 = vmov 20  }
  0x10   :  { %53 = vperm.xlu1 %213, %v28_v2   ;;  %37 = vperm.xlu0 %212, %v28_v2   ;;  %v189_v8 = vld [vmem:[%s300_s1] ss:$0 sm:$0xff]  ;;  %s272_s1 = smov [#allocation5]  }
  0x11   :  { %200 = vmatprep.mubr.msk.f32.mxu0 %vm68_vm0, %v27_v3  ;;  %s180_s17 = sshll.u32 %s272_s1, 4  ;;  %s181_s17 = int_to_ptr.vmem [resolvable:$true] %s180_s17 }
  0x12   :  { %s240_s18 = scalar_lea.vmem %s181_s17, 16  ;;  %s244_s19 = scalar_lea.vmem %s181_s17, 32 }
  0x13   :  { %p241_p5 = scmp.ne.s32.totalorder %s181_s17, %s240_s18  ;;  %p245_p6 = scmp.lt.s32.totalorder %s181_s17, %s181_s17 }
  0x14   :  { %49 = vperm.xlu1 %213, %v27_v3   ;;  %32 = vperm.xlu0 %212, %v27_v3   ;;  %p246_p7 = scmp.lt.s32.totalorder %s244_s19, %s240_s18 }
  0x16   :  { %p247_p8 = por %p246_p7, %p245_p6 }
  0x18   :  { %214 = vset.pattern.permute.xlu0 %v269_v4  ;;  %215 = vset.pattern.permute.xlu1 %v269_v4  ;;  %p248_p9 = pnand %p247_p8, %p241_p5 }
  0x19   :  { %61 = vperm.xlu0 %214, %v27_v3   ;;  %65 = vperm.xlu1 %215, %v28_v2  }
  0x1d   :  { %217 = vset.pattern.permute.xlu0 %v270_v5  ;;  %216 = vset.pattern.permute.xlu1 %v270_v5 }
  0x1e   :  { %155 = vperm.xlu0 %217, %v28_v2   ;;  %151 = vperm.xlu1 %216, %v27_v3  }
  0x22   :  { %218 = vset.pattern.permute.xlu1 %v271_v7  ;;  %219 = vset.pattern.permute.xlu0 %v271_v7 }
  0x23   :  { %169 = vperm.xlu1 %218, %v29_v6  }
  0x8b   :  { %v54_v9 = vpop.permute.xlu1 %53  ;;  %v38_v10 = vpop.permute.xlu0 %37 }
  0x8c   :  { %v47_v11 = vmul.f32 %v189_v8, %v38_v10 }
  0x8e   :  { %v57_v12 = vadd.f32 %v54_v9, %v47_v11 }
  0x8f   :  { %v33_v13 = vpop.permute.xlu0 %32  ;;  %v50_v16 = vpop.permute.xlu1 %49 }
  0x90   :  { %v46_v14 = vmul.f32 %v189_v8, %v33_v13  ;;  %v59_v15 = vmax.f32 %v57_v12, 0.0 }
  0x92   :  { %v56_v17 = vadd.f32 %v50_v16, %v46_v14  ;;  %196 = vmatprep.subr.mxu0 %v59_v15 }
  0x93   :  { %197 = vmatpush3.msra.mxu0 %v59_v15 }
  0x94   :  { %v58_v18 = vmax.f32 %v56_v17, 0.0  ;;  %v66_v19 = vpop.permute.xlu1 %65  ;;  %v62_v20 = vpop.permute.xlu0 %61 }
  0x96   :  { %198 = vmatprep.subr.mxu0 %v58_v18 }
  0x97   :  { %199 = vmatpush3.msra.mxu0 %v58_v18 }
  0x98   :  { %201 = vmatmul.mubr.msk.f32.vlgmr.msra.gmra.mxu0 %vm68_vm0, %v28_v2 }
  0x99   :  { %v156_v26 = vpop.permute.xlu0 %155  ;;  %v152_v27 = vpop.permute.xlu1 %151 }
  0x9e   :  { %v170_v37 = vpop.permute.xlu1 %169 }
 0x158   :  { %v202_v21 = vpop.f32.mrf.mxu0 }
 0x159   :  { %v145_v22 = vadd.f32 %v202_v21, %v66_v19 }
 0x15a   :  { %v139_v23 = vpop.f32.mrf.mxu0 }
 0x15b   :  { %v149_v24 = vmax.f32 %v145_v22, 0.0  ;;  %v140_v25 = vadd.f32 %v139_v23, %v62_v20 }
 0x15d   :  { %v148_v28 = vmax.f32 %v140_v25, 0.0  ;;  %v159_v29 = vmul.f32 %v156_v26, %v149_v24 }
 0x15f   :  { %v158_v30 = vmul.f32 %v152_v27, %v148_v28 }
 0x161   :  { %v160_v31 = vadd.f32 %v159_v29, %v158_v30 }
 0x163   :  { %v161_v32 = vrot.slane %v160_v31, 4 }
 0x165   :  { %v162_v33 = vadd.f32 %v161_v32, %v160_v31 }
 0x167   :  { %v163_v34 = vrot.slane %v162_v33, 2 }
 0x169   :  { %v164_v35 = vadd.f32 %v163_v34, %v162_v33 }
 0x16b   :  { %v165_v36 = vrot.slane %v164_v35, 1 }
 0x16d   :  { %v166_v38 = vadd.f32 %v165_v36, %v164_v35 }
 0x16f   :  { %v172_v39 = vadd.f32 %v170_v37, %v166_v38 }
 0x171   :  { %173 = vst [vmem:[#allocation5] sm:$0x1] %v172_v39 }
 0x172   :  { %251 = shalt.err (!%p248_p9)
}
 0x173   :  { %183 = dma.vmem_to_hbm [thread:$0]  %s181_s17, 16, %s301_s2, [#allocation4]  }
 0x174   :  { %262 = dma.done.wait [#allocation4], 16  }
 0x175   :  { %263 = vsyncadd [#allocation4], 4294967280 }
 0x176   :  { %187 = vsyncpa [#allocation3], 1 }
 0x177   :  { %188 = vsyncpa [#allocation4], 1 }

</bundles_post_ra>
